<compile_context>
chip_gen: v5e
topology: v5e:2x2
jax: 0.10.0
libtpu: 0.0.40
codegen_flags: <defaults>
</compile_context>

<pallas_src>
import functools

import jax
import jax.numpy as jnp
from jax import lax
from jax.experimental import pallas as pl
from jax.experimental.pallas import tpu as pltpu

BN_EPS = 1e-5


# ---------------------------------------------------------------------------
# Generation-aware VMEM budgeting (v5e/v6e: 128 MiB, v7x: 64 MiB per core)
# ---------------------------------------------------------------------------
@functools.lru_cache(maxsize=1)
def _vmem_capacity_bytes():
    try:
        cap = getattr(pltpu.get_tpu_info(), "vmem_capacity_bytes", None)
        if cap:
            return int(cap)
    except Exception:
        pass
    return 64 * 1024 * 1024                      # conservative (v7x-sized) default


@functools.lru_cache(maxsize=1)
def _vmem_limit_bytes():
    return int(_vmem_capacity_bytes()) * 3 // 4


# ---------------------------------------------------------------------------
# Pallas kernel: fused 3x3 / stride-2 conv (4 macro taps) + BN shift + ReLU
# ---------------------------------------------------------------------------
def _conv3x3_s2_bn_relu_kernel(xs_ref, w_ref, shift_ref, o_ref, *, th, wo, cin4, cout):
    """xs_ref:    (1, Ho+1, Wo+1, 4*Cin) bf16  (padded, 2x2 space-to-depth input)
       w_ref:     (4, 4*Cin, Cout)       bf16  (BN scale folded; unused taps zeroed)
       shift_ref: (1, Cout)              f32   (BN shift)
       o_ref:     (1, th, Wo, Cout)
    """
    row0 = pl.multiple_of(pl.program_id(1) * th, th)
    # Fold the BN shift into the accumulator init (broadcasts on the first add).
    acc = shift_ref[...].astype(jnp.float32)                     # (1, cout)
    for d in range(4):                                            # 4 macro taps (2x2 window)
        dh, dw = d // 2, d % 2
        tap = xs_ref[0, pl.ds(row0 + dh, th), pl.ds(dw, wo), :]   # (th, wo, 4*Cin), lane-dense
        acc = acc + jnp.dot(tap.reshape(th * wo, cin4), w_ref[d],
                            preferred_element_type=jnp.float32)   # MXU, M = th*wo
    y = jnp.maximum(acc, 0.0).reshape(th, wo, cout)               # fused ReLU
    o_ref[0] = y.astype(o_ref.dtype)                              # whole-slab store


def _pick_row_tile(ho, wo, cin4, cout, budget):
    """Largest divisor of Ho whose working set fits the VMEM budget; prefer >= 2
    row tiles per image (megacore / pipelining) unless that forces tiny tiles."""
    fixed = (ho + 1) * (wo + 1) * cin4 * 2 * 2        # resident xs (bf16, 2x safety)
    fixed += 4 * cin4 * cout * 2 * 2                  # resident weights
    fixed += cout * 8                                 # shift

    def fits(t):
        per = t * wo * (cout * 2 * 2 + cout * 4 + cin4 * 2 * 2)   # out(2x) + f32 acc + taps
        return fixed + per <= budget

    divs = sorted((t for t in range(1, ho + 1) if ho % t == 0), reverse=True)
    fitting = [t for t in divs if fits(t)]
    if not fitting:
        return 1
    two = [t for t in fitting if ho // t >= 2]
    if two and two[0] * 4 >= ho:                      # >=2 tiles, each still >= Ho/4 rows
        return two[0]
    return fitting[0]


def _space_to_depth_pad(x):
    """pad=1 + 2x2 space-to-depth: xs[b,i,j,(p*2+q)*Cin+c] = xpad[b,2i+p,2j+q,c]."""
    B, H, W, Cin = x.shape
    Ho, Wo = H // 2, W // 2
    xp = jnp.pad(x, ((0, 0), (1, 1), (1, 1), (0, 0)))
    xs = xp.reshape(B, Ho + 1, 2, Wo + 1, 2, Cin)
    return xs.transpose(0, 1, 3, 2, 4, 5).reshape(B, Ho + 1, Wo + 1, 4 * Cin)


def _pack_w4(w_oihw):
    """(Cout,Cin,3,3) -> (4, 4*Cin, Cout): w4[dh*2+dw, (p*2+q)*Cin+c, o] =
    w[o,c,2*dh+p,2*dw+q], zero when kh==3 or kw==3 (the unused 2x2-window taps)."""
    Cout, Cin, _, _ = w_oihw.shape
    w_pad = jnp.pad(w_oihw, ((0, 0), (0, 0), (0, 1), (0, 1)))     # kh,kw in 0..3
    w_r = w_pad.reshape(Cout, Cin, 2, 2, 2, 2)                    # (o, c, dh, p, dw, q)
    return jnp.transpose(w_r, (2, 4, 3, 5, 1, 0)).reshape(4, 4 * Cin, Cout)


def conv3x3_s2_bn_relu(x, w_folded_oihw, shift, *, out_dtype=jnp.bfloat16):
    """x: (B,H,W,Cin) bf16; w_folded_oihw: (Cout,Cin,3,3) f32 with BN scale folded;
       shift: (Cout,) f32  ->  (B, H//2, W//2, Cout) out_dtype."""
    B, H, W, Cin = x.shape
    assert H % 2 == 0 and W % 2 == 0, "conv3x3_s2 requires even spatial dims"
    Ho, Wo = H // 2, W // 2
    Cout = w_folded_oihw.shape[0]

    w4 = _pack_w4(w_folded_oihw).astype(jnp.bfloat16)             # (4, 4*Cin, Cout)
    xs = _space_to_depth_pad(x)                                   # (B, Ho+1, Wo+1, 4*Cin)

    if Cin <= 4:
        # Layer-0 path (Cin=3): K per tap is tiny -> cheap wrapper-side im2col
        # (K = 16*Cin, ~1x extra HBM at this layer) + one fused matmul per tile.
        cols = jnp.concatenate(
            [xs[:, dh:dh + Ho, dw:dw + Wo, :] for dh in (0, 1) for dw in (0, 1)],
            axis=-1)                                              # (B, Ho, Wo, 16*Cin)
        y = matmul_bias(cols.reshape(B * Ho * Wo, 16 * Cin),
                        w4.reshape(16 * Cin, Cout), shift,
                        relu=True, out_dtype=out_dtype)
        return y.reshape(B, Ho, Wo, Cout)

    th = _pick_row_tile(Ho, Wo, 4 * Cin, Cout, _vmem_limit_bytes())
    kernel = functools.partial(_conv3x3_s2_bn_relu_kernel,
                               th=th, wo=Wo, cin4=4 * Cin, cout=Cout)
    return pl.pallas_call(
        kernel,
        out_shape=jax.ShapeDtypeStruct((B, Ho, Wo, Cout), out_dtype),
        grid=(B, Ho // th),
        in_specs=[
            # whole packed image per batch, constant along the row-tile axis
            # (DMA'd once per batch, stays resident in VMEM)
            pl.BlockSpec((1, Ho + 1, Wo + 1, 4 * Cin), lambda b, i: (b, 0, 0, 0)),
            pl.BlockSpec((4, 4 * Cin, Cout), lambda b, i: (0, 0, 0)),
            pl.BlockSpec((1, Cout), lambda b, i: (0, 0)),
        ],
        out_specs=pl.BlockSpec((1, th, Wo, Cout), lambda b, i: (b, i, 0, 0)),
        compiler_params=pltpu.CompilerParams(
            dimension_semantics=("parallel", "parallel"),
            vmem_limit_bytes=_vmem_limit_bytes()),
    )(xs, w4, shift.reshape(1, Cout).astype(jnp.float32))


# ---------------------------------------------------------------------------
# Pallas kernel: fused matmul + bias (+ optional ReLU)
# ---------------------------------------------------------------------------
def _matmul_bias_kernel(x_ref, w_ref, b_ref, o_ref, *, relu):
    acc = jnp.dot(x_ref[...], w_ref[...], preferred_element_type=jnp.float32)
    acc = acc + b_ref[...]
    if relu:
        acc = jnp.maximum(acc, 0.0)
    o_ref[...] = acc.astype(o_ref.dtype)


def _pick_m_tile(mp, cap=256):
    best = 8
    for t in range(8, min(mp, cap) + 1, 8):
        if mp % t == 0:
            best = t
    return best


def matmul_bias(x, w, b, *, relu=False, out_dtype=jnp.float32):
    """x: (M, K) bf16, w: (K, N) bf16, b: (N,) f32 -> (M, N) out_dtype.
    M is padded to a multiple of 8 so the grid never collapses to an unaligned block."""
    M, K = x.shape
    N = w.shape[1]
    mp = ((M + 7) // 8) * 8
    tm = _pick_m_tile(mp)
    if mp != M:
        x = jnp.pad(x, ((0, mp - M), (0, 0)))
    flops = 2 * mp * K * N
    bytes_accessed = (mp * K + K * N) * x.dtype.itemsize + mp * N * jnp.dtype(out_dtype).itemsize
    out = pl.pallas_call(
        functools.partial(_matmul_bias_kernel, relu=relu),
        out_shape=jax.ShapeDtypeStruct((mp, N), out_dtype),
        grid=(mp // tm,),
        in_specs=[
            pl.BlockSpec((tm, K), lambda i: (i, 0)),
            pl.BlockSpec((K, N), lambda i: (0, 0)),     # resident weights
            pl.BlockSpec((1, N), lambda i: (0, 0)),
        ],
        out_specs=pl.BlockSpec((tm, N), lambda i: (i, 0)),
        compiler_params=pltpu.CompilerParams(
            dimension_semantics=("parallel",),
            vmem_limit_bytes=_vmem_limit_bytes()),
        cost_estimate=pl.CostEstimate(flops=flops, transcendentals=0,
                                      bytes_accessed=bytes_accessed),
    )(x, w, b.reshape(1, N).astype(jnp.float32))
    return out[:M] if mp != M else out


# ---------------------------------------------------------------------------
# ConvStem forward (Pallas for every conv / BN / ReLU hot path)
# ---------------------------------------------------------------------------
def conv_stem_forward(x_nchw, params):
    B, C, H, W = x_nchw.shape
    assert H % 16 == 0 and W % 16 == 0, "ConvStem (patch_size=16) needs H, W % 16 == 0"
    x = jnp.transpose(x_nchw, (0, 2, 3, 1)).astype(jnp.bfloat16)   # NHWC, bf16 for MXU

    for l in range(4):
        w = params[f"conv{l}_w"]                                   # (Cout, Cin, 3, 3) f32
        gamma, beta, mean, var = params[f"bn{l}"]
        scale = gamma / jnp.sqrt(var + BN_EPS)
        shift = beta - mean * scale
        x = conv3x3_s2_bn_relu(x, w * scale[:, None, None, None], shift,
                               out_dtype=jnp.bfloat16)

    # Final 1x1 conv (with bias), no BN / ReLU, then flatten(2).transpose(1, 2).
    wp = params["proj_w"]                                          # (E, Cin, 1, 1)
    bp = params["proj_b"]                                          # (E,)
    E, Cin = wp.shape[0], wp.shape[1]
    Bx, Hx, Wx, _ = x.shape
    y = matmul_bias(x.reshape(Bx * Hx * Wx, Cin),
                    wp.reshape(E, Cin).T.astype(jnp.bfloat16), bp,
                    relu=False, out_dtype=jnp.float32)
    return y.reshape(Bx, Hx * Wx, E)                               # (B, num_patches, embed_dim)


# ---------------------------------------------------------------------------
# Pure-JAX references (lax conv).  matmul_dtype=bf16 mirrors the kernel's
# operand precision exactly; matmul_dtype=f32 is the full-precision reference.
# ---------------------------------------------------------------------------
def conv_stem_reference(x_nchw, params, *, matmul_dtype=jnp.float32):
    x = x_nchw.astype(jnp.float32)
    for l in range(4):
        w = params[f"conv{l}_w"]
        gamma, beta, mean, var = params[f"bn{l}"]
        scale = gamma / jnp.sqrt(var + BN_EPS)
        shift = beta - mean * scale
        w_f = w * scale[:, None, None, None]                       # fold scale (same as kernel)
        y = lax.conv_general_dilated(
            x.astype(matmul_dtype), w_f.astype(matmul_dtype), (2, 2), ((1, 1), (1, 1)),
            dimension_numbers=("NCHW", "OIHW", "NCHW"),
            preferred_element_type=jnp.float32)
        x = jnp.maximum(y + shift[None, :, None, None], 0.0)
        if matmul_dtype == jnp.bfloat16:
            x = x.astype(jnp.bfloat16).astype(jnp.float32)         # match bf16 activation storage
    wp = params["proj_w"]
    bp = params["proj_b"]
    y = lax.conv_general_dilated(
        x.astype(matmul_dtype), wp.astype(matmul_dtype), (1, 1), ((0, 0), (0, 0)),
        dimension_numbers=("NCHW", "OIHW", "NCHW"),
        preferred_element_type=jnp.float32)
    y = y + bp[None, :, None, None]
    Bn, E, Hn, Wn = y.shape
    return y.reshape(Bn, E, Hn * Wn).transpose(0, 2, 1)


# ---------------------------------------------------------------------------
# Deterministic parameter construction (shapes per ConvStem.__init__)
# ---------------------------------------------------------------------------
def make_params(key, in_chans, embed_dim):
    del in_chans  # ConvStem hardcodes the first conv's input channels to 3
    params = {}
    input_dim, output_dim = 3, embed_dim // 8
    for l in range(4):
        key, kw, kg, kb, km, kv = jax.random.split(key, 6)
        params[f"conv{l}_w"] = 0.1 * jax.random.normal(
            kw, (output_dim, input_dim, 3, 3), jnp.float32)
        gamma = 1.0 + 0.1 * jax.random.normal(kg, (output_dim,), jnp.float32)
        beta = 0.1 * jax.random.normal(kb, (output_dim,), jnp.float32)
        mean = 0.1 * jax.random.normal(km, (output_dim,), jnp.float32)
        var = jax.random.uniform(kv, (output_dim,), jnp.float32, 0.5, 1.5)
        params[f"bn{l}"] = (gamma, beta, mean, var)
        input_dim = output_dim
        output_dim *= 2
    key, kw, kb = jax.random.split(key, 3)
    params["proj_w"] = 0.1 * jax.random.normal(
        kw, (embed_dim, input_dim, 1, 1), jnp.float32)
    params["proj_b"] = 0.1 * jax.random.normal(kb, (embed_dim,), jnp.float32)
    return params


if __name__ == "__main__":
    # Small shapes consistent with the module: patch_size=16 => 4 stride-2 convs,
    # img_size=32 -> 2x2 patch grid, embed_dim=64 (divisible by 8), in_chans=3.
    B, C, H, W = 2, 3, 32, 32
    embed_dim = 64

    key = jax.random.PRNGKey(0)
    key, kx = jax.random.split(key)
    x = jax.random.normal(kx, (B, C, H, W), jnp.float32)
    params = make_params(key, C, embed_dim)

    out = jax.block_until_ready(conv_stem_forward(x, params))
    assert out.shape == (B, (H // 16) * (W // 16), embed_dim), out.shape

    # exact-precision check (reference uses the same bf16 operands / f32 accumulation)
    ref_bf16 = jax.block_until_ready(
        conv_stem_reference(x, params, matmul_dtype=jnp.bfloat16))
    assert jnp.allclose(out, ref_bf16, atol=2e-3, rtol=2e-3), (
        float(jnp.max(jnp.abs(out - ref_bf16))))

    # loose check against the full-f32 reference (bf16 operand rounding only)
    ref_f32 = jax.block_until_ready(
        conv_stem_reference(x, params, matmul_dtype=jnp.float32))
    assert jnp.allclose(out, ref_f32, atol=8e-2, rtol=8e-2), (
        float(jnp.max(jnp.abs(out - ref_f32))))

    print("KERNEL_OK")
</pallas_src>

<mosaic_0001>
module attributes {stable_mosaic.version = 11 : i64} {
  func.func @_matmul_bias_kernel(%arg0: i32, %arg1: memref<256x48xbf16, #tpu.memory_space<vmem>>, %arg2: memref<48x8xbf16, #tpu.memory_space<vmem>>, %arg3: memref<1x8xf32, #tpu.memory_space<vmem>>, %arg4: memref<256x8xbf16, #tpu.memory_space<vmem>>) attributes {dimension_semantics = [#tpu.dimension_semantics<parallel>], iteration_bounds = array<i64: 2>, scalar_prefetch = 0 : i64, scratch_operands = 0 : i64, tpu.core_type = #tpu.core_type<tc>, window_params = [{transform_indices = @transform_0, window_bounds = array<i64: 256, 48>}, {pipeline_mode = #tpu.pipeline_mode<synchronous>, transform_indices = @transform_1, window_bounds = array<i64: 48, 8>}, {pipeline_mode = #tpu.pipeline_mode<synchronous>, transform_indices = @transform_2, window_bounds = array<i64: 1, 8>}, {transform_indices = @transform_3, window_bounds = array<i64: 256, 8>}]} {
    %c0 = arith.constant 0 : index
    %c0_0 = arith.constant 0 : index
    %0 = vector.load %arg1[%c0, %c0_0] : memref<256x48xbf16, #tpu.memory_space<vmem>>, vector<256x48xbf16>
    %c0_1 = arith.constant 0 : index
    %c0_2 = arith.constant 0 : index
    %1 = vector.load %arg2[%c0_1, %c0_2] : memref<48x8xbf16, #tpu.memory_space<vmem>>, vector<48x8xbf16>
    %cst = arith.constant dense<0.000000e+00> : vector<256x8xf32>
    %2 = tpu.matmul %0, %1, %cst {dimension_numbers = #tpu.dot_dimension_numbers<[1], [0], [0], [1], [0, 0, 1, 1], [], []>} : vector<256x48xbf16>, vector<48x8xbf16>, vector<256x8xf32> -> vector<256x8xf32>
    %c0_3 = arith.constant 0 : index
    %c0_4 = arith.constant 0 : index
    %3 = vector.load %arg3[%c0_3, %c0_4] : memref<1x8xf32, #tpu.memory_space<vmem>>, vector<1x8xf32>
    %4 = vector.broadcast %3 : vector<1x8xf32> to vector<256x8xf32>
    %5 = arith.addf %2, %4 : vector<256x8xf32>
    %cst_5 = arith.constant 0.000000e+00 : f32
    %6 = vector.broadcast %cst_5 : f32 to vector<256x8xf32>
    %7 = arith.maximumf %5, %6 : vector<256x8xf32>
    %8 = arith.truncf %7 : vector<256x8xf32> to vector<256x8xbf16>
    %c0_6 = arith.constant 0 : index
    %c0_7 = arith.constant 0 : index
    %9 = vector.load %arg4[%c0_6, %c0_7] : memref<256x8xbf16, #tpu.memory_space<vmem>>, vector<256x8xbf16>
    tpu.vector_store %arg4[%c0_6, %c0_7], %8 {strides = array<i32>} : memref<256x8xbf16, #tpu.memory_space<vmem>>, vector<256x8xbf16>,
    return
  }
  func.func @transform_0(%arg0: i32) -> (i32, i32) {
    %c0_i32 = arith.constant 0 : i32
    %c0_i32_0 = arith.constant 0 : i32
    return %arg0, %c0_i32 : i32, i32
  }
  func.func @transform_1(%arg0: i32) -> (i32, i32) {
    %c0_i32 = arith.constant 0 : i32
    %c0_i32_0 = arith.constant 0 : i32
    %c0_i32_1 = arith.constant 0 : i32
    return %c0_i32, %c0_i32_0 : i32, i32
  }
  func.func @transform_2(%arg0: i32) -> (i32, i32) {
    %c0_i32 = arith.constant 0 : i32
    %c0_i32_0 = arith.constant 0 : i32
    %c0_i32_1 = arith.constant 0 : i32
    return %c0_i32, %c0_i32_0 : i32, i32
  }
  func.func @transform_3(%arg0: i32) -> (i32, i32) {
    %c0_i32 = arith.constant 0 : i32
    %c0_i32_0 = arith.constant 0 : i32
    return %arg0, %c0_i32 : i32, i32
  }
}

</mosaic_0001>

<bundles_post_ra>
// kernel: tpu_custom_call.1
= control target key start
LH: loop header
LB: loop body
LE: loop exit
PB: predicated region body
PF: predicated region fallthrough
CT: control target
= control target key end

     0   :  { %s774_s12 = smov 0   ;;  %s944_s0 = inlined_call_operand.vmem [shape: bf16[512,48], index: 0, kind: input, shape index: {}]   ;;  %s945_s1 = inlined_call_operand.vmem [shape: bf16[48,8], index: 1, kind: input, shape index: {}]   ;;  %s946_s2 = inlined_call_operand.vmem [shape: f32[1,8], index: 2, kind: input, shape index: {}]   ;;  %s947_s3 = inlined_call_operand.vmem [shape: bf16[512,8], index: 3, kind: output, shape index: {}]  }
   0x1 LB: > { %s606_s13 = sadd.s32 4294967295, %s752_s12   ;;  %p610_p0 = scmp.ge.s32.totalorder %s752_s12, 1  ;;  %s752_s12 = sphi %s774_s12, %s13_s12  }
   0x2   : > { %p138_p1 = scmp.lt.s32.totalorder %s752_s12, 3 }
   0x4   : > { %p139_p2 = pnand %p610_p0, %p138_p1 }
   0x5   : > { %s611_s16 = sshll.u32 (!%p139_p2), %s606_s13, 5 }
   0x6   : > { %142 = sbr.rel (%p139_p2) target bundleno = 220 (0xdc), region = 32  ;;  %p163_p3 = scmp.lt.s32.totalorder (!%p139_p2), %s611_s16, 63 }
   0xb   : > { %v727_v0 = vld [vmem:[%s945_s1 + $0x10] sm:$0xff]  ;;  %v726_v1 = vld [vmem:[%s945_s1 + $0x8] sm:$0xff]  ;;  %s949_s16 = smov (!%p163_p3, %s611_s16), 63  ;;  %v725_v2 = vld [vmem:[%s945_s1] sm:$0xff]  ;;  %vm315_vm0 = vcmask 392192   ;;  %vm517_vm1 = vcmask 60416  }
   0xc   : > { %369 = vmatpush.bf16.msra.mxu0 %v727_v0  ;;  %728 = vmatpush.bf16.msra.mxu1 %v727_v0  ;;  %s612_s19 = sshll.u32 %s949_s16, 2  ;;  %v836_v19 = vld [vmem:[%s946_s2] ss:$0 sm:$0xff] }
   0xd   : > { %729 = vmatpush.bf16.msra.mxu2 %v727_v0  ;;  %730 = vmatpush.bf16.msra.mxu3 %v727_v0  ;;  %s799_s24 = scalar_lea.vmem %s944_s0, %s612_s19  ;;  %s845_s29 = scalar_lea.vmem %s947_s3, %s612_s19 }
   0xe   : > { %v709_v3 = vld [vmem:[%s799_s24] sm:$0xff]  ;;  %v710_v7 = vld [vmem:[%s799_s24 + $0x8] sm:$0xff]  ;;  %v711_v11 = vld [vmem:[%s799_s24 + $0x10] sm:$0xff] }
   0xf   : > { %v713_v4 = vld [vmem:[%s799_s24 + $0x20] sm:$0xff]  ;;  %v714_v8 = vld [vmem:[%s799_s24 + $0x28] sm:$0xff]  ;;  %v715_v12 = vld [vmem:[%s799_s24 + $0x30] sm:$0xff] }
  0x10   : > { %370 = vmatpush.bf16.msra.mxu0 %v726_v1  ;;  %731 = vmatpush.bf16.msra.mxu1 %v726_v1  ;;  %v717_v5 = vld [vmem:[%s799_s24 + $0x40] sm:$0xff]  ;;  %v718_v9 = vld [vmem:[%s799_s24 + $0x48] sm:$0xff]  ;;  %v719_v13 = vld [vmem:[%s799_s24 + $0x50] sm:$0xff] }
  0x11   : > { %732 = vmatpush.bf16.msra.mxu2 %v726_v1  ;;  %733 = vmatpush.bf16.msra.mxu3 %v726_v1  ;;  %v721_v6 = vld [vmem:[%s799_s24 + $0x60] sm:$0xff]  ;;  %v722_v10 = vld [vmem:[%s799_s24 + $0x68] sm:$0xff]  ;;  %v723_v14 = vld [vmem:[%s799_s24 + $0x70] sm:$0xff] }
  0x12   : > { %v712_v15 = vld [vmem:[%s799_s24 + $0x18] sm:$0xff] }
  0x13   : > { %v716_v16 = vld [vmem:[%s799_s24 + $0x38] sm:$0xff] }
  0x14   : > { %371 = vmatpush.bf16.msra.mxu0 %v725_v2  ;;  %734 = vmatpush.bf16.msra.mxu1 %v725_v2  ;;  %v720_v17 = vld [vmem:[%s799_s24 + $0x58] sm:$0xff] }
  0x15   : > { %735 = vmatpush.bf16.msra.mxu2 %v725_v2  ;;  %736 = vmatpush.bf16.msra.mxu3 %v725_v2  ;;  %v724_v18 = vld [vmem:[%s799_s24 + $0x78] sm:$0xff] }
  0x17   : > { %691 = vmatmul.msk.bf16.vlgmr.msra.gmra.mxu0 %vm315_vm0, %v709_v3  ;;  %695 = vmatmul.msk.bf16.vlgmr.msra.gmra.mxu1 %vm315_vm0, %v713_v4 }
  0x18   : > { %699 = vmatmul.msk.bf16.vlgmr.msra.gmra.mxu2 %vm315_vm0, %v717_v5  ;;  %703 = vmatmul.msk.bf16.vlgmr.msra.gmra.mxu3 %vm315_vm0, %v721_v6 }
  0x27   : > { %692 = vmatmul.msk.bf16.gmra.mxu0 %vm315_vm0, %v710_v7  ;;  %696 = vmatmul.msk.bf16.gmra.mxu1 %vm315_vm0, %v714_v8 }
  0x28   : > { %700 = vmatmul.msk.bf16.gmra.mxu2 %vm315_vm0, %v718_v9  ;;  %704 = vmatmul.msk.bf16.gmra.mxu3 %vm315_vm0, %v722_v10 }
  0x37   : > { %693 = vmatmul.msk.bf16.gmra.mxu0 %vm315_vm0, %v711_v11  ;;  %697 = vmatmul.msk.bf16.gmra.mxu1 %vm315_vm0, %v715_v12 }
  0x38   : > { %701 = vmatmul.msk.bf16.gmra.mxu2 %vm315_vm0, %v719_v13  ;;  %705 = vmatmul.msk.bf16.gmra.mxu3 %vm315_vm0, %v723_v14 }
  0x47   : > { %694 = vmatmul.msk.bf16.gmra.mxu0 %vm315_vm0, %v712_v15  ;;  %698 = vmatmul.msk.bf16.gmra.mxu1 %vm315_vm0, %v716_v16 }
  0x48   : > { %702 = vmatmul.msk.bf16.gmra.mxu2 %vm315_vm0, %v720_v17  ;;  %706 = vmatmul.msk.bf16.gmra.mxu3 %vm315_vm0, %v724_v18 }
  0x94   : > { %v373_v20 = vpop.f32.mrf.mxu0  ;;  %v393_v21 = vpop.f32.mrf.mxu1 }
  0x95   : > { %v374_v22 = vadd.f32 %v836_v19, %v373_v20  ;;  %v394_v23 = vadd.f32 %v836_v19, %v393_v21 }
  0x97   : > { %v453_v24 = vmax.f32 %v374_v22, 0.0  ;;  %v461_v25 = vmax.f32 %v394_v23, 0.0 }
  0x99   : > { %v485_v26 = vpack.c.bf16 %v453_v24, %v453_v24  ;;  %v493_v27 = vpack.c.bf16 %v461_v25, %v461_v25 }
  0x9b   : > { %518 = vst.msk [vmem:[%s845_s29] sm:$0xf] %vm517_vm1, %v485_v26  ;;  %v413_v28 = vpop.f32.mrf.mxu2  ;;  %v433_v29 = vpop.f32.mrf.mxu3 }
  0x9c   : > { %526 = vst.msk [vmem:[%s845_s29 + $0x20] sm:$0xf] %vm517_vm1, %v493_v27  ;;  %v414_v30 = vadd.f32 %v836_v19, %v413_v28  ;;  %v434_v31 = vadd.f32 %v836_v19, %v433_v29  ;;  %v375_v32 = vpop.f32.mrf.mxu0  ;;  %v395_v33 = vpop.f32.mrf.mxu1 }
  0x9d   : > { %v376_v34 = vadd.f32 %v836_v19, %v375_v32  ;;  %v396_v35 = vadd.f32 %v836_v19, %v395_v33 }
  0x9e   : > { %v469_v36 = vmax.f32 %v414_v30, 0.0  ;;  %v477_v37 = vmax.f32 %v434_v31, 0.0 }
  0x9f   : > { %v454_v38 = vmax.f32 %v376_v34, 0.0  ;;  %v462_v39 = vmax.f32 %v396_v35, 0.0 }
  0xa0   : > { %v501_v40 = vpack.c.bf16 %v469_v36, %v469_v36  ;;  %v509_v41 = vpack.c.bf16 %v477_v37, %v477_v37 }
  0xa1   : > { %v486_v42 = vpack.c.bf16 %v454_v38, %v454_v38  ;;  %v494_v43 = vpack.c.bf16 %v462_v39, %v462_v39 }
  0xa2   : > { %534 = vst.msk [vmem:[%s845_s29 + $0x40] sm:$0xf] %vm517_vm1, %v501_v40 }
  0xa3   : > { %542 = vst.msk [vmem:[%s845_s29 + $0x60] sm:$0xf] %vm517_vm1, %v509_v41  ;;  %v415_v44 = vpop.f32.mrf.mxu2  ;;  %v435_v45 = vpop.f32.mrf.mxu3 }
  0xa4   : > { %519 = vst.msk [vmem:[%s845_s29 + $0x4] sm:$0xf] %vm517_vm1, %v486_v42  ;;  %v416_v46 = vadd.f32 %v836_v19, %v415_v44  ;;  %v436_v47 = vadd.f32 %v836_v19, %v435_v45  ;;  %v378_v48 = vpop.f32.mrf.mxu0  ;;  %v398_v49 = vpop.f32.mrf.mxu1 }
  0xa5   : > { %527 = vst.msk [vmem:[%s845_s29 + $0x24] sm:$0xf] %vm517_vm1, %v494_v43  ;;  %v379_v50 = vadd.f32 %v836_v19, %v378_v48  ;;  %v399_v51 = vadd.f32 %v836_v19, %v398_v49 }
  0xa6   : > { %v470_v52 = vmax.f32 %v416_v46, 0.0  ;;  %v478_v53 = vmax.f32 %v436_v47, 0.0 }
  0xa7   : > { %v455_v54 = vmax.f32 %v379_v50, 0.0  ;;  %v463_v55 = vmax.f32 %v399_v51, 0.0 }
  0xa8   : > { %v502_v56 = vpack.c.bf16 %v470_v52, %v470_v52  ;;  %v510_v57 = vpack.c.bf16 %v478_v53, %v478_v53 }
  0xa9   : > { %v487_v58 = vpack.c.bf16 %v455_v54, %v455_v54  ;;  %v495_v59 = vpack.c.bf16 %v463_v55, %v463_v55 }
  0xaa   : > { %535 = vst.msk [vmem:[%s845_s29 + $0x44] sm:$0xf] %vm517_vm1, %v502_v56 }
  0xab   : > { %543 = vst.msk [vmem:[%s845_s29 + $0x64] sm:$0xf] %vm517_vm1, %v510_v57  ;;  %v418_v60 = vpop.f32.mrf.mxu2  ;;  %v438_v61 = vpop.f32.mrf.mxu3 }
  0xac   : > { %520 = vst.msk [vmem:[%s845_s29 + $0x8] sm:$0xf] %vm517_vm1, %v487_v58  ;;  %v419_v62 = vadd.f32 %v836_v19, %v418_v60  ;;  %v439_v63 = vadd.f32 %v836_v19, %v438_v61  ;;  %v380_v0 = vpop.f32.mrf.mxu0  ;;  %v400_v1 = vpop.f32.mrf.mxu1 }
  0xad   : > { %528 = vst.msk [vmem:[%s845_s29 + $0x28] sm:$0xf] %vm517_vm1, %v495_v59  ;;  %v381_v2 = vadd.f32 %v836_v19, %v380_v0  ;;  %v401_v3 = vadd.f32 %v836_v19, %v400_v1 }
  0xae   : > { %v471_v4 = vmax.f32 %v419_v62, 0.0  ;;  %v479_v5 = vmax.f32 %v439_v63, 0.0 }
  0xaf   : > { %v456_v6 = vmax.f32 %v381_v2, 0.0  ;;  %v464_v7 = vmax.f32 %v401_v3, 0.0 }
  0xb0   : > { %v503_v8 = vpack.c.bf16 %v471_v4, %v471_v4  ;;  %v511_v9 = vpack.c.bf16 %v479_v5, %v479_v5 }
  0xb1   : > { %v488_v10 = vpack.c.bf16 %v456_v6, %v456_v6  ;;  %v496_v11 = vpack.c.bf16 %v464_v7, %v464_v7 }
  0xb2   : > { %536 = vst.msk [vmem:[%s845_s29 + $0x48] sm:$0xf] %vm517_vm1, %v503_v8 }
  0xb3   : > { %544 = vst.msk [vmem:[%s845_s29 + $0x68] sm:$0xf] %vm517_vm1, %v511_v9  ;;  %v420_v12 = vpop.f32.mrf.mxu2  ;;  %v440_v13 = vpop.f32.mrf.mxu3 }
  0xb4   : > { %521 = vst.msk [vmem:[%s845_s29 + $0xc] sm:$0xf] %vm517_vm1, %v488_v10  ;;  %v421_v14 = vadd.f32 %v836_v19, %v420_v12  ;;  %v441_v15 = vadd.f32 %v836_v19, %v440_v13  ;;  %v383_v16 = vpop.f32.mrf.mxu0  ;;  %v403_v17 = vpop.f32.mrf.mxu1 }
  0xb5   : > { %529 = vst.msk [vmem:[%s845_s29 + $0x2c] sm:$0xf] %vm517_vm1, %v496_v11  ;;  %v384_v18 = vadd.f32 %v836_v19, %v383_v16  ;;  %v404_v20 = vadd.f32 %v836_v19, %v403_v17 }
  0xb6   : > { %v472_v21 = vmax.f32 %v421_v14, 0.0  ;;  %v480_v22 = vmax.f32 %v441_v15, 0.0 }
  0xb7   : > { %v457_v23 = vmax.f32 %v384_v18, 0.0  ;;  %v465_v24 = vmax.f32 %v404_v20, 0.0 }
  0xb8   : > { %v504_v25 = vpack.c.bf16 %v472_v21, %v472_v21  ;;  %v512_v26 = vpack.c.bf16 %v480_v22, %v480_v22 }
  0xb9   : > { %v489_v27 = vpack.c.bf16 %v457_v23, %v457_v23  ;;  %v497_v28 = vpack.c.bf16 %v465_v24, %v465_v24 }
  0xba   : > { %537 = vst.msk [vmem:[%s845_s29 + $0x4c] sm:$0xf] %vm517_vm1, %v504_v25 }
  0xbb   : > { %545 = vst.msk [vmem:[%s845_s29 + $0x6c] sm:$0xf] %vm517_vm1, %v512_v26  ;;  %v423_v29 = vpop.f32.mrf.mxu2  ;;  %v443_v30 = vpop.f32.mrf.mxu3 }
  0xbc   : > { %522 = vst.msk [vmem:[%s845_s29 + $0x10] sm:$0xf] %vm517_vm1, %v489_v27  ;;  %v424_v31 = vadd.f32 %v836_v19, %v423_v29  ;;  %v444_v32 = vadd.f32 %v836_v19, %v443_v30  ;;  %v385_v33 = vpop.f32.mrf.mxu0  ;;  %v405_v34 = vpop.f32.mrf.mxu1 }
  0xbd   : > { %530 = vst.msk [vmem:[%s845_s29 + $0x30] sm:$0xf] %vm517_vm1, %v497_v28  ;;  %v386_v35 = vadd.f32 %v836_v19, %v385_v33  ;;  %v406_v36 = vadd.f32 %v836_v19, %v405_v34 }
  0xbe   : > { %v473_v37 = vmax.f32 %v424_v31, 0.0  ;;  %v481_v38 = vmax.f32 %v444_v32, 0.0 }
  0xbf   : > { %v458_v39 = vmax.f32 %v386_v35, 0.0  ;;  %v466_v40 = vmax.f32 %v406_v36, 0.0 }
  0xc0   : > { %v505_v41 = vpack.c.bf16 %v473_v37, %v473_v37  ;;  %v513_v42 = vpack.c.bf16 %v481_v38, %v481_v38 }
  0xc1   : > { %v490_v43 = vpack.c.bf16 %v458_v39, %v458_v39  ;;  %v498_v44 = vpack.c.bf16 %v466_v40, %v466_v40 }
  0xc2   : > { %538 = vst.msk [vmem:[%s845_s29 + $0x50] sm:$0xf] %vm517_vm1, %v505_v41 }
  0xc3   : > { %546 = vst.msk [vmem:[%s845_s29 + $0x70] sm:$0xf] %vm517_vm1, %v513_v42  ;;  %v425_v45 = vpop.f32.mrf.mxu2  ;;  %v445_v46 = vpop.f32.mrf.mxu3 }
  0xc4   : > { %523 = vst.msk [vmem:[%s845_s29 + $0x14] sm:$0xf] %vm517_vm1, %v490_v43  ;;  %v426_v47 = vadd.f32 %v836_v19, %v425_v45  ;;  %v446_v48 = vadd.f32 %v836_v19, %v445_v46  ;;  %v388_v49 = vpop.f32.mrf.mxu0  ;;  %v408_v50 = vpop.f32.mrf.mxu1 }
  0xc5   : > { %531 = vst.msk [vmem:[%s845_s29 + $0x34] sm:$0xf] %vm517_vm1, %v498_v44  ;;  %v389_v51 = vadd.f32 %v836_v19, %v388_v49  ;;  %v409_v52 = vadd.f32 %v836_v19, %v408_v50 }
  0xc6   : > { %v474_v53 = vmax.f32 %v426_v47, 0.0  ;;  %v482_v54 = vmax.f32 %v446_v48, 0.0 }
  0xc7   : > { %v459_v55 = vmax.f32 %v389_v51, 0.0  ;;  %v467_v56 = vmax.f32 %v409_v52, 0.0 }
  0xc8   : > { %v506_v57 = vpack.c.bf16 %v474_v53, %v474_v53  ;;  %v514_v58 = vpack.c.bf16 %v482_v54, %v482_v54 }
  0xc9   : > { %v491_v59 = vpack.c.bf16 %v459_v55, %v459_v55  ;;  %v499_v60 = vpack.c.bf16 %v467_v56, %v467_v56 }
  0xca   : > { %539 = vst.msk [vmem:[%s845_s29 + $0x54] sm:$0xf] %vm517_vm1, %v506_v57 }
  0xcb   : > { %547 = vst.msk [vmem:[%s845_s29 + $0x74] sm:$0xf] %vm517_vm1, %v514_v58  ;;  %v428_v61 = vpop.f32.mrf.mxu2  ;;  %v448_v62 = vpop.f32.mrf.mxu3 }
  0xcc   : > { %524 = vst.msk [vmem:[%s845_s29 + $0x18] sm:$0xf] %vm517_vm1, %v491_v59  ;;  %v429_v63 = vadd.f32 %v836_v19, %v428_v61  ;;  %v449_v0 = vadd.f32 %v836_v19, %v448_v62  ;;  %v390_v1 = vpop.f32.mrf.mxu0  ;;  %v410_v2 = vpop.f32.mrf.mxu1 }
  0xcd   : > { %532 = vst.msk [vmem:[%s845_s29 + $0x38] sm:$0xf] %vm517_vm1, %v499_v60  ;;  %v391_v3 = vadd.f32 %v836_v19, %v390_v1  ;;  %v411_v4 = vadd.f32 %v836_v19, %v410_v2 }
  0xce   : > { %v475_v5 = vmax.f32 %v429_v63, 0.0  ;;  %v483_v6 = vmax.f32 %v449_v0, 0.0 }
  0xcf   : > { %v460_v7 = vmax.f32 %v391_v3, 0.0  ;;  %v468_v8 = vmax.f32 %v411_v4, 0.0 }
  0xd0   : > { %v507_v9 = vpack.c.bf16 %v475_v5, %v475_v5  ;;  %v515_v10 = vpack.c.bf16 %v483_v6, %v483_v6 }
  0xd1   : > { %v492_v11 = vpack.c.bf16 %v460_v7, %v460_v7  ;;  %v500_v12 = vpack.c.bf16 %v468_v8, %v468_v8 }
  0xd2   : > { %540 = vst.msk [vmem:[%s845_s29 + $0x58] sm:$0xf] %vm517_vm1, %v507_v9 }
  0xd3   : > { %548 = vst.msk [vmem:[%s845_s29 + $0x78] sm:$0xf] %vm517_vm1, %v515_v10  ;;  %v430_v13 = vpop.f32.mrf.mxu2  ;;  %v450_v14 = vpop.f32.mrf.mxu3 }
  0xd4   : > { %525 = vst.msk [vmem:[%s845_s29 + $0x1c] sm:$0xf] %vm517_vm1, %v492_v11  ;;  %v431_v15 = vadd.f32 %v836_v19, %v430_v13  ;;  %v451_v16 = vadd.f32 %v836_v19, %v450_v14 }
  0xd5   : > { %533 = vst.msk [vmem:[%s845_s29 + $0x3c] sm:$0xf] %vm517_vm1, %v500_v12 }
  0xd6   : > { %v476_v17 = vmax.f32 %v431_v15, 0.0  ;;  %v484_v18 = vmax.f32 %v451_v16, 0.0 }
  0xd8   : > { %v508_v20 = vpack.c.bf16 %v476_v17, %v476_v17  ;;  %v516_v21 = vpack.c.bf16 %v484_v18, %v484_v18 }
  0xda   : > { %541 = vst.msk [vmem:[%s845_s29 + $0x5c] sm:$0xf] %vm517_vm1, %v508_v20 }
  0xdb   : > { %549 = vst.msk [vmem:[%s845_s29 + $0x7c] sm:$0xf] %vm517_vm1, %v516_v21 }
  0xdc PF: > { %s13_s12 = sadd.s32 1, %s752_s12  }
  0xdd   : > { %p10_p4 = scmp.ge.s32.totalorder %s13_s12, 4  }
  0xdf   :  { %12 = sbr.rel (!%p10_p4) target bundleno = 1 (0x1), region = 62 }

</bundles_post_ra>
